<compile_context>
chip_gen: v7x
topology: tpu7x:2x2x1
jax: 0.10.0
libtpu: 0.0.40
codegen_flags: <defaults>
</compile_context>

<pallas_src>
import functools

import numpy as np
import jax
import jax.numpy as jnp
from jax import lax
from jax.experimental import pallas as pl
from jax.experimental.pallas import tpu as pltpu

LANE = 128


def _cdiv(a, b):
    return -(-a // b)


# --------------------------------- kernel ------------------------------------
def _focal_kernel(x_ref, t_ref, out_ref, *, n_class, alpha_vec, gamma, smooth,
                  apply_softmax, total_voxels, tile_rows, chunk_rows, out_rows):
    """One grid step: fused channel softmax + clamped one-hot focal loss for a
    (TR, 128) slab of voxels of one batch, reduced to a (out_rows, 128) partial sum."""
    k = pl.program_id(1)
    n_chunks = tile_rows // chunk_rows

    uniform_alpha = all(a == alpha_vec[0] for a in alpha_vec)
    lo = smooth / (n_class - 1) if (smooth and n_class > 1) else 0.0
    hi = 1.0 - smooth if smooth else 1.0

    row_iota = lax.broadcasted_iota(jnp.int32, (chunk_rows, LANE), 0)
    lane_iota = lax.broadcasted_iota(jnp.int32, (chunk_rows, LANE), 1)

    def chunk(i, acc):
        start = i * chunk_rows
        if not isinstance(start, int):
            start = pl.multiple_of(start, chunk_rows)

        # Channel loads straight from the ref (no full-slab materialization); upcast to
        # f32 in-register so bf16 inputs only pay half the HBM bytes.
        ch = [x_ref[0, c, pl.ds(start, chunk_rows), :].astype(jnp.float32)
              for c in range(n_class)]
        t = t_ref[0, pl.ds(start, chunk_rows), :]          # int32 class ids

        if apply_softmax:
            m = ch[0]
            for c in range(1, n_class):
                m = jnp.maximum(m, ch[c])
            e = [jnp.exp(ch[c] - m) for c in range(n_class)]
            s = e[0]
            for c in range(1, n_class):
                s = s + e[c]
            inv = pl.reciprocal(s, approx=False)
            p = [e[c] * inv for c in range(n_class)]
        else:
            p = ch

        # Gather p[target] (and alpha[target]) with integer compares / selects.
        masks = [t == c for c in range(1, n_class)]
        p_t = p[0]
        for c in range(1, n_class):
            p_t = jnp.where(masks[c - 1], p[c], p_t)

        # pt = hi*p_t + lo*(sum_p - p_t) + smooth ; with fused softmax sum_p == 1.
        if apply_softmax or lo == 0.0:
            pt = (hi - lo) * p_t + (lo + smooth)
        else:
            sum_p = p[0]
            for c in range(1, n_class):
                sum_p = sum_p + p[c]
            pt = (hi - lo) * p_t + lo * sum_p + smooth

        # Ragged-tail / partial-block mask: force pt -> 1 BEFORE the log so out-of-range
        # garbage rows can never produce NaN/Inf; their loss contribution is exactly 0.
        gidx = (k * tile_rows + i * chunk_rows + row_iota) * LANE + lane_iota
        pt = jnp.where(gidx < total_voxels, pt, 1.0)

        logpt = jnp.log(pt)
        one_minus = 1.0 - pt

        g = float(gamma)
        if g == int(g) and int(g) >= 0:
            gi = int(g)
            if gi == 0:
                focal = jnp.ones_like(pt)
            else:
                focal = one_minus
                for _ in range(gi - 1):
                    focal = focal * one_minus
        else:
            # TODO(synk): non-integer gamma relies on lax.pow (exp/log) lowering, like torch.pow;
            # one_minus is clamped to >=0 to avoid NaN from softmax rounding pt slightly above 1.
            focal = jnp.power(jnp.maximum(one_minus, 0.0), g)

        contrib = focal * logpt
        if not uniform_alpha:
            a_t = jnp.full_like(p_t, jnp.float32(alpha_vec[0]))
            for c in range(1, n_class):
                a_t = jnp.where(masks[c - 1], jnp.float32(alpha_vec[c]), a_t)
            contrib = a_t * contrib
        return acc + contrib

    acc0 = jnp.zeros((chunk_rows, LANE), jnp.float32)
    if n_chunks == 1:
        acc = chunk(0, acc0)
    else:
        acc = lax.fori_loop(0, n_chunks, chunk, acc0)

    # Sublane-reduce the (chunk_rows,128) accumulator to the (out_rows,128) output block.
    red = acc[0:out_rows]
    for r in range(out_rows, chunk_rows, out_rows):
        red = red + acc[r:r + out_rows]

    # -1 (and the scalar alpha when all alphas are equal) folded into the single final scale.
    scale = -alpha_vec[0] if uniform_alpha else -1.0
    out_ref[0, 0] = jnp.float32(scale) * red


# -------------------------------- wrapper -------------------------------------
def focal_loss(logit, target, *, apply_nonlin="softmax", alpha=None, gamma=2,
               balance_index=0, smooth=1e-5, size_average=True, tile_rows=None):
    """Pallas-TPU forward pass of FocalLoss.

    logit:  (B, C, *spatial) float32 / bfloat16 logits (probabilities if apply_nonlin is None)
    target: (B, 1, *spatial) or (B, *spatial) integer class labels
    apply_nonlin: None, "softmax" (fused inside the kernel), or a callable (applied in XLA).
    """
    if smooth is not None and (smooth < 0 or smooth > 1.0):
        raise ValueError('smooth value should be in [0,1]')

    x = jnp.asarray(logit)
    if callable(apply_nonlin):
        x = jnp.asarray(apply_nonlin(x))
        fuse_softmax = False
    else:
        fuse_softmax = (apply_nonlin == "softmax")
    if not (x.dtype == jnp.float32 or x.dtype == jnp.bfloat16):
        x = x.astype(jnp.float32)          # f32 / bf16 pass straight through (no wrapper cast)

    B, C = int(x.shape[0]), int(x.shape[1])
    spatial = x.shape[2:]
    S = int(np.prod(spatial)) if len(spatial) else 1
    N = B * S

    # --- static per-class alpha vector (same branching as the reference module) ---
    if alpha is None:
        alpha_vec = [1.0] * C
    elif isinstance(alpha, (list, tuple, np.ndarray)):
        a = np.asarray(alpha, np.float64).reshape(-1)
        assert a.size == C
        a = a / a.sum()
        alpha_vec = [float(v) for v in a]
    elif isinstance(alpha, float):
        a = np.full((C,), 1.0 - alpha, np.float64)
        a[balance_index] = alpha
        alpha_vec = [float(v) for v in a]
    else:
        raise TypeError('Not support alpha type')

    # --- targets: keep int32 (no float32 cast pass over HBM) ---
    t = jnp.asarray(target).reshape(B, S)
    if t.dtype != jnp.int32:
        t = t.astype(jnp.int32)

    # --- layout: flatten spatial to dense (R, 128) rows; no TR*128 padding ---
    x = x.reshape(B, C, S)
    R = _cdiv(S, LANE)
    S128 = R * LANE
    if S128 != S:
        # TODO(synk): this minimal (<128 voxel) pad still copies the tensor once; a fully
        # pad-free ragged path would need an unreshaped (B,C,S) lane layout.
        x = jnp.pad(x, ((0, 0), (0, 0), (0, S128 - S)))
        t = jnp.pad(t, ((0, 0), (0, S128 - S)))
    x = x.reshape(B, C, R, LANE)
    t = t.reshape(B, R, LANE)

    # --- tile sizing: derive TR from C/dtype against a ~24 MiB double-buffer budget ---
    itemsize = 2 if x.dtype == jnp.bfloat16 else 4
    min_sub = 16 if x.dtype == jnp.bfloat16 else 8
    if tile_rows is None:
        budget = 24 * 1024 * 1024
        tr = budget // (2 * (C * itemsize + 4) * LANE)
    else:
        tr = int(tile_rows)

    if R <= min_sub:
        TR = R                                    # single full-extent tile (block == array dim)
    else:
        cap = (R // min_sub) * min_sub            # largest aligned tile that fits in the array
        TR = max(min_sub, min(tr, 2048, cap))
        TR = (TR // min_sub) * min_sub
    n_tiles = _cdiv(R, TR)

    # register-resident chunk rows for the inner loop
    CH = TR
    for c_rows in (32, 16, 8):
        if TR % c_rows == 0:
            CH = c_rows
            break
    SUB = 8 if CH % 8 == 0 else CH                # per-(b,k) output block rows

    kernel = functools.partial(
        _focal_kernel, n_class=C, alpha_vec=tuple(alpha_vec), gamma=gamma,
        smooth=(float(smooth) if smooth else 0.0), apply_softmax=fuse_softmax,
        total_voxels=S, tile_rows=TR, chunk_rows=CH, out_rows=SUB)

    partials = pl.pallas_call(
        kernel,
        out_shape=jax.ShapeDtypeStruct((B, n_tiles, SUB, LANE), jnp.float32),
        grid_spec=pltpu.PrefetchScalarGridSpec(
            num_scalar_prefetch=0,
            grid=(B, n_tiles),
            in_specs=[
                # NOTE(v5e): if xprof shows exposed DMA on the strided C-chunk logit block,
                # add pipeline_mode=pl.Buffered(3) here (one extra ~TR*128*C*itemsize buffer).
                pl.BlockSpec((1, C, TR, LANE), lambda b, k: (b, 0, k, 0)),
                pl.BlockSpec((1, TR, LANE), lambda b, k: (b, k, 0)),
            ],
            out_specs=pl.BlockSpec((1, 1, SUB, LANE), lambda b, k: (b, k, 0, 0)),
        ),
        compiler_params=pltpu.CompilerParams(
            # Per-(b,k) output blocks -> both axes independent; keeps both v7x TensorCores
            # busy even when B == 1.  No effect on v5e/v6e (1 TC).
            dimension_semantics=("parallel", "parallel"),
        ),
    )(x, t)

    total = jnp.sum(partials)
    if size_average:
        return total / jnp.float32(N)
    return total


# ------------------------------ numpy reference --------------------------------
def _softmax_np(x, axis):
    m = x.max(axis=axis, keepdims=True)
    e = np.exp(x - m)
    return e / e.sum(axis=axis, keepdims=True)


def _reference_focal_loss(logit, target, alpha=None, gamma=2, balance_index=0,
                          smooth=1e-5, size_average=True, apply_softmax=True):
    logit = np.asarray(logit, np.float64)
    target = np.asarray(target)
    if apply_softmax:
        logit = _softmax_np(logit, axis=1)
    num_class = logit.shape[1]
    if logit.ndim > 2:
        logit = logit.reshape(logit.shape[0], num_class, -1)
        logit = np.transpose(logit, (0, 2, 1)).reshape(-1, num_class)
    tgt = target.reshape(-1).astype(np.int64)

    if alpha is None:
        alpha_v = np.ones(num_class, np.float64)
    elif isinstance(alpha, (list, tuple, np.ndarray)):
        alpha_v = np.asarray(alpha, np.float64).reshape(-1)
        alpha_v = alpha_v / alpha_v.sum()
    elif isinstance(alpha, float):
        alpha_v = np.full(num_class, 1.0 - alpha, np.float64)
        alpha_v[balance_index] = alpha
    else:
        raise TypeError('Not support alpha type')

    one_hot = np.zeros((tgt.size, num_class), np.float64)
    one_hot[np.arange(tgt.size), tgt] = 1.0
    if smooth:
        one_hot = np.clip(one_hot, smooth / (num_class - 1), 1.0 - smooth)
    pt = (one_hot * logit).sum(1) + smooth
    logpt = np.log(pt)
    a = alpha_v[tgt]
    loss = -a * np.power(1.0 - pt, gamma) * logpt
    return loss.mean() if size_average else loss.sum()


if __name__ == "__main__":
    key = jax.random.PRNGKey(0)
    k1, k2, k3, k4, k5, k6 = jax.random.split(key, 6)

    # Case 1: 3-D volume, multi-tile grid with a masked partial edge tile (R=32, TR=24).
    B, C = 2, 4
    spatial = (16, 16, 16)
    logits = jax.random.normal(k1, (B, C) + spatial, dtype=jnp.float32)
    target = jax.random.randint(k2, (B, 1) + spatial, 0, C)
    loss = focal_loss(logits, target, apply_nonlin="softmax", alpha=None,
                      gamma=2, smooth=1e-5, tile_rows=24)
    loss = jax.block_until_ready(loss)
    ref = _reference_focal_loss(np.asarray(logits), np.asarray(target),
                                alpha=None, gamma=2, smooth=1e-5, apply_softmax=True)
    np.testing.assert_allclose(float(loss), float(ref), rtol=1e-4, atol=1e-6)

    # Case 2: ragged 2-D spatial (S % 128 != 0 -> minimal pad + in-kernel mask) + list alpha.
    B2, C2 = 2, 3
    spatial2 = (13, 17)
    logits2 = jax.random.normal(k3, (B2, C2) + spatial2, dtype=jnp.float32)
    target2 = jax.random.randint(k4, (B2, 1) + spatial2, 0, C2)
    loss2 = focal_loss(logits2, target2, apply_nonlin="softmax",
                       alpha=[1.0, 2.0, 3.0], gamma=2, smooth=1e-5)
    loss2 = jax.block_until_ready(loss2)
    ref2 = _reference_focal_loss(np.asarray(logits2), np.asarray(target2),
                                 alpha=[1.0, 2.0, 3.0], gamma=2, smooth=1e-5,
                                 apply_softmax=True)
    np.testing.assert_allclose(float(loss2), float(ref2), rtol=1e-4, atol=1e-6)

    # Case 3: bf16 logits, B=1 (megacore-split case), scalar-float alpha, derived tile size.
    B3, C3 = 1, 4
    spatial3 = (8, 16, 32)
    logits3 = jax.random.normal(k5, (B3, C3) + spatial3, dtype=jnp.float32).astype(jnp.bfloat16)
    target3 = jax.random.randint(k6, (B3, 1) + spatial3, 0, C3)
    loss3 = focal_loss(logits3, target3, apply_nonlin="softmax",
                       alpha=0.25, balance_index=1, gamma=2, smooth=1e-5)
    loss3 = jax.block_until_ready(loss3)
    ref3 = _reference_focal_loss(np.asarray(logits3.astype(jnp.float32)), np.asarray(target3),
                                 alpha=0.25, balance_index=1, gamma=2, smooth=1e-5,
                                 apply_softmax=True)
    np.testing.assert_allclose(float(loss3), float(ref3), rtol=1e-4, atol=1e-6)

    print("KERNEL_OK")
</pallas_src>

<mosaic_0001>
module attributes {stable_mosaic.version = 11 : i64} {
  func.func @_focal_kernel(%arg0: i32, %arg1: i32, %arg2: memref<1x4x24x128xf32, #tpu.memory_space<vmem>>, %arg3: memref<1x24x128xi32, #tpu.memory_space<vmem>>, %arg4: memref<1x1x8x128xf32, #tpu.memory_space<vmem>>) attributes {dimension_semantics = [#tpu.dimension_semantics<parallel>, #tpu.dimension_semantics<parallel>], iteration_bounds = array<i64: 2, 2>, scalar_prefetch = 0 : i64, scratch_operands = 0 : i64, tpu.core_type = #tpu.core_type<tc>, window_params = [{transform_indices = @transform_0, window_bounds = array<i64: 1, 4, 24, 128>}, {transform_indices = @transform_1, window_bounds = array<i64: 1, 24, 128>}, {transform_indices = @transform_2, window_bounds = array<i64: 1, 1, 8, 128>}]} {
    %0 = tpu.iota {dimensions = array<i32: 0>} : vector<8x128xi32>
    %1 = tpu.iota {dimensions = array<i32: 1>} : vector<8x128xi32>
    %cst = arith.constant 0.000000e+00 : f32
    %2 = vector.broadcast %cst : f32 to vector<8x128xf32>
    %c0_i32 = arith.constant 0 : i32
    %c3_i32 = arith.constant 3 : i32
    %3 = arith.addi %c0_i32, %c3_i32 : i32
    %c1_i32 = arith.constant 1 : i32
    %4 = scf.for %arg5 = %c0_i32 to %3 step %c1_i32 iter_args(%arg6 = %2) -> (vector<8x128xf32>)  : i32 {
      %c8_i32 = arith.constant 8 : i32
      %10 = arith.muli %arg5, %c8_i32 : i32
      %11 = tpu.assume_multiple %10, 8 : i32
      %c0_5 = arith.constant 0 : index
      %c0_6 = arith.constant 0 : index
      %12 = arith.index_cast %11 : i32 to index
      %c0_7 = arith.constant 0 : index
      %13 = vector.load %arg2[%c0_5, %c0_6, %12, %c0_7] : memref<1x4x24x128xf32, #tpu.memory_space<vmem>>, vector<1x1x8x128xf32>
      %14 = vector.shape_cast %13 : vector<1x1x8x128xf32> to vector<8x128xf32>
      %c0_8 = arith.constant 0 : index
      %c1 = arith.constant 1 : index
      %15 = arith.index_cast %11 : i32 to index
      %c0_9 = arith.constant 0 : index
      %16 = vector.load %arg2[%c0_8, %c1, %15, %c0_9] : memref<1x4x24x128xf32, #tpu.memory_space<vmem>>, vector<1x1x8x128xf32>
      %17 = vector.shape_cast %16 : vector<1x1x8x128xf32> to vector<8x128xf32>
      %c0_10 = arith.constant 0 : index
      %c2 = arith.constant 2 : index
      %18 = arith.index_cast %11 : i32 to index
      %c0_11 = arith.constant 0 : index
      %19 = vector.load %arg2[%c0_10, %c2, %18, %c0_11] : memref<1x4x24x128xf32, #tpu.memory_space<vmem>>, vector<1x1x8x128xf32>
      %20 = vector.shape_cast %19 : vector<1x1x8x128xf32> to vector<8x128xf32>
      %c0_12 = arith.constant 0 : index
      %c3 = arith.constant 3 : index
      %21 = arith.index_cast %11 : i32 to index
      %c0_13 = arith.constant 0 : index
      %22 = vector.load %arg2[%c0_12, %c3, %21, %c0_13] : memref<1x4x24x128xf32, #tpu.memory_space<vmem>>, vector<1x1x8x128xf32>
      %23 = vector.shape_cast %22 : vector<1x1x8x128xf32> to vector<8x128xf32>
      %c0_14 = arith.constant 0 : index
      %24 = arith.index_cast %11 : i32 to index
      %c0_15 = arith.constant 0 : index
      %25 = vector.load %arg3[%c0_14, %24, %c0_15] : memref<1x24x128xi32, #tpu.memory_space<vmem>>, vector<1x8x128xi32>
      %26 = vector.shape_cast %25 : vector<1x8x128xi32> to vector<8x128xi32>
      %27 = arith.maximumf %14, %17 : vector<8x128xf32>
      %28 = arith.maximumf %27, %20 : vector<8x128xf32>
      %29 = arith.maximumf %28, %23 : vector<8x128xf32>
      %30 = arith.subf %14, %29 : vector<8x128xf32>
      %31 = math.exp %30 : vector<8x128xf32>
      %32 = arith.subf %17, %29 : vector<8x128xf32>
      %33 = math.exp %32 : vector<8x128xf32>
      %34 = arith.subf %20, %29 : vector<8x128xf32>
      %35 = math.exp %34 : vector<8x128xf32>
      %36 = arith.subf %23, %29 : vector<8x128xf32>
      %37 = math.exp %36 : vector<8x128xf32>
      %38 = arith.addf %31, %33 : vector<8x128xf32>
      %39 = arith.addf %38, %35 : vector<8x128xf32>
      %40 = arith.addf %39, %37 : vector<8x128xf32>
      %41 = tpu.reciprocal %40 : vector<8x128xf32> -> vector<8x128xf32>
      %42 = arith.mulf %31, %41 : vector<8x128xf32>
      %43 = arith.mulf %33, %41 : vector<8x128xf32>
      %44 = arith.mulf %35, %41 : vector<8x128xf32>
      %45 = arith.mulf %37, %41 : vector<8x128xf32>
      %c1_i32_16 = arith.constant 1 : i32
      %46 = vector.broadcast %c1_i32_16 : i32 to vector<8x128xi32>
      %47 = arith.cmpi eq, %26, %46 : vector<8x128xi32>
      %c2_i32 = arith.constant 2 : i32
      %48 = vector.broadcast %c2_i32 : i32 to vector<8x128xi32>
      %49 = arith.cmpi eq, %26, %48 : vector<8x128xi32>
      %c3_i32_17 = arith.constant 3 : i32
      %50 = vector.broadcast %c3_i32_17 : i32 to vector<8x128xi32>
      %51 = arith.cmpi eq, %26, %50 : vector<8x128xi32>
      %52 = arith.select %47, %43, %42 : vector<8x128xi1>, vector<8x128xf32>
      %53 = arith.select %49, %44, %52 : vector<8x128xi1>, vector<8x128xf32>
      %54 = arith.select %51, %45, %53 : vector<8x128xi1>, vector<8x128xf32>
      %cst_18 = arith.constant 0.999986648 : f32
      %55 = vector.broadcast %cst_18 : f32 to vector<8x128xf32>
      %56 = arith.mulf %55, %54 : vector<8x128xf32>
      %cst_19 = arith.constant 1.33333333E-5 : f32
      %57 = vector.broadcast %cst_19 : f32 to vector<8x128xf32>
      %58 = arith.addf %56, %57 : vector<8x128xf32>
      %c24_i32 = arith.constant 24 : i32
      %59 = arith.muli %arg1, %c24_i32 : i32
      %c8_i32_20 = arith.constant 8 : i32
      %60 = arith.muli %arg5, %c8_i32_20 : i32
      %61 = arith.addi %59, %60 : i32
      %62 = vector.broadcast %61 : i32 to vector<8x128xi32>
      %63 = arith.addi %62, %0 : vector<8x128xi32>
      %c128_i32 = arith.constant 128 : i32
      %64 = vector.broadcast %c128_i32 : i32 to vector<8x128xi32>
      %65 = arith.muli %63, %64 : vector<8x128xi32>
      %66 = arith.addi %65, %1 : vector<8x128xi32>
      %c4096_i32 = arith.constant 4096 : i32
      %67 = vector.broadcast %c4096_i32 : i32 to vector<8x128xi32>
      %68 = arith.cmpi slt, %66, %67 : vector<8x128xi32>
      %cst_21 = arith.constant 1.000000e+00 : f32
      %69 = vector.broadcast %cst_21 : f32 to vector<8x128xf32>
      %70 = arith.select %68, %58, %69 : vector<8x128xi1>, vector<8x128xf32>
      %71 = math.log %70 : vector<8x128xf32>
      %cst_22 = arith.constant 1.000000e+00 : f32
      %72 = vector.broadcast %cst_22 : f32 to vector<8x128xf32>
      %73 = arith.subf %72, %70 : vector<8x128xf32>
      %74 = arith.mulf %73, %73 : vector<8x128xf32>
      %75 = arith.mulf %74, %71 : vector<8x128xf32>
      %76 = arith.addf %arg6, %75 : vector<8x128xf32>
      scf.yield %76 : vector<8x128xf32>
    }
    %c3_i32_0 = arith.constant 3 : i32
    %cst_1 = arith.constant -1.000000e+00 : f32
    %5 = vector.broadcast %cst_1 : f32 to vector<8x128xf32>
    %6 = arith.mulf %5, %4 : vector<8x128xf32>
    %c0 = arith.constant 0 : index
    %c0_2 = arith.constant 0 : index
    %c0_3 = arith.constant 0 : index
    %c0_4 = arith.constant 0 : index
    %7 = vector.load %arg4[%c0, %c0_2, %c0_3, %c0_4] : memref<1x1x8x128xf32, #tpu.memory_space<vmem>>, vector<1x1x8x128xf32>
    %8 = vector.shape_cast %7 : vector<1x1x8x128xf32> to vector<8x128xf32>
    %9 = vector.shape_cast %6 : vector<8x128xf32> to vector<1x1x8x128xf32>
    tpu.vector_store %arg4[%c0, %c0_2, %c0_3, %c0_4], %9 {strides = array<i32>} : memref<1x1x8x128xf32, #tpu.memory_space<vmem>>, vector<1x1x8x128xf32>,
    return
  }
  func.func @transform_0(%arg0: i32, %arg1: i32) -> (i32, i32, i32, i32) {
    %c0_i32 = arith.constant 0 : i32
    %c0_i32_0 = arith.constant 0 : i32
    %c0_i32_1 = arith.constant 0 : i32
    return %arg0, %c0_i32, %arg1, %c0_i32_0 : i32, i32, i32, i32
  }
  func.func @transform_1(%arg0: i32, %arg1: i32) -> (i32, i32, i32) {
    %c0_i32 = arith.constant 0 : i32
    %c0_i32_0 = arith.constant 0 : i32
    return %arg0, %arg1, %c0_i32 : i32, i32, i32
  }
  func.func @transform_2(%arg0: i32, %arg1: i32) -> (i32, i32, i32, i32) {
    %c0_i32 = arith.constant 0 : i32
    %c0_i32_0 = arith.constant 0 : i32
    %c0_i32_1 = arith.constant 0 : i32
    return %arg0, %arg1, %c0_i32, %c0_i32_0 : i32, i32, i32, i32
  }
}

</mosaic_0001>

<bundles_post_ra>
// kernel: tpu_custom_call.1
= control target key start
LH: loop header
LB: loop body
LE: loop exit
PB: predicated region body
PF: predicated region fallthrough
CT: control target
= control target key end

     0   :  { %7 = vsyncpa [#allocation3], 0  ;;  %s1056_s0 = inlined_call_operand.hbm [shape: f32[2,4,32,128], index: 0, kind: input, shape index: {}]   ;;  %s1057_s1 = inlined_call_operand.hbm [shape: s32[2,32,128], index: 1, kind: input, shape index: {}]   ;;  %s1058_s2 = inlined_call_operand.hbm [shape: f32[2,2,8,128], index: 2, kind: output, shape index: {}]  }
   0x1   :  { %9 = vsyncpa [#allocation3 + $0x1], 0 }
   0x2   :  { %10 = vsyncpa [#allocation6], 0 }
   0x3   :  { %12 = vsyncpa [#allocation6 + $0x1], 0 }
   0x4   :  { %13 = vsyncpa [#allocation4], 0 }
   0x5   :  { %15 = vsyncpa [#allocation4 + $0x1], 0  ;;  %s812_s9 = smov 0   ;;  %s814_s10 = smov 0  }
   0x6   :  { %s816_s11 = smov 0   ;;  %s818_s12 = smov 0  }
   0x7   :  { %s820_s13 = smov 0   ;;  %s822_s14 = smov 0  }
   0x8   :  { %s824_s15 = smov 0   ;;  %s826_s16 = smov 0  }
   0x9 LB: > { %1063 = sst [smem:[#allocation13_spill]] %s750_s9  ;;  %s493_s17 = sadd.s32 4294967295, %s778_s16   ;;  %s778_s16 = sphi %s826_s16, %s21_s16   ;;  %s774_s15 = sphi %s824_s15, %s1085_s15   ;;  %s770_s14 = sphi %s822_s14, %s1084_s14   ;;  %s766_s13 = sphi %s820_s13, %s1083_s13   ;;  %s762_s12 = sphi %s818_s12, %s1082_s12   ;;  %s758_s11 = sphi %s816_s11, %s1081_s11   ;;  %s754_s10 = sphi %s814_s10, %s1080_s10   ;;  %s750_s9 = sphi %s812_s9, %s1079_s9  }
   0xa   : > { %s494_s18 = sadd.s32 4294967294, %s778_s16   ;;  %s30_s19 = sadd.s32 1, %s770_s14 }
   0xb   : > { %p31_p0 = scmp.ge.s32.totalorder %s30_s19, 2  ;;  %s33_s20 = sadd.s32 1, %s774_s15 }
   0xc   : > { %p49_p1 = scmp.ne.s32.totalorder %s758_s11, %s754_s10  ;;  %p50_p2 = scmp.eq.s32.totalorder %s778_s16, 0 }
   0xd   : > { %s1087_s19 = smov (%p31_p0, %s30_s19), 0  ;;  %s1089_s20 = smov (!%p31_p0, %s33_s20), %s774_s15 }
   0xe   : > { %1064 = sst [smem:[#allocation14_spill]] %s1087_s19  ;;  %s38_s21 = ssub.s32 %s770_s14, %s1087_s19 }
   0xf   : > { %p864_p3 = por %p50_p2, %p49_p1  ;;  %p35_p4 = scmp.ge.s32.totalorder %s1089_s20, 2 }
  0x10   : > { %p55_p5 = scmp.ne.s32.totalorder %s754_s10, %s750_s9  ;;  %p56_p6 = scmp.eq.s32.totalorder %s493_s17, 0 }
  0x11   : > { %p109_p7 = scmp.eq.s32.totalorder %s493_s17, 3  ;;  %s1091_s20 = smov (%p35_p4, %s1089_s20), 0 }
  0x12   : > { %1066 = sst [smem:[#allocation15_spill]] %s1091_s20  ;;  %p872_p8 = por %p56_p6, %p55_p5 }
  0x13   : > { %p876_p9 = por %p109_p7, %p49_p1  ;;  %s37_s25 = ssub.s32 %s774_s15, %s1091_s20 }
  0x14   : > { %p115_p10 = scmp.eq.s32.totalorder %s494_s18, 3  ;;  %s39_s26 = sor.u32 %s38_s21, %s37_s25 }
  0x15   : > { %s42_s27 = sadd.s32 1, %s758_s11  ;;  %p40_p11 = scmp.eq.s32.totalorder %s39_s26, 0 }
  0x16   : > { %p883_p12 = por %p115_p10, %p55_p5  ;;  %p496_p13 = scmp.ge.s32.totalorder %s778_s16, 4 }
  0x17   : > { %s888_s29 = scalar_select %p40_p11, %s758_s11, %s42_s27  }
  0x18   : > { %s1069_s28 = scalar_select %p883_p12, 1, 0 }
  0x19   : > { %1071 = sst [smem:[#allocation17_spill]] %s888_s29  ;;  %131 = sbr.rel (%p496_p13) target bundleno = 94 (0x5e), region = 16 }
  0x1a   : > { %1070 = sst [smem:[#allocation16_spill]] %s1069_s28 }
  0x20   : > { %134 = sbr.rel (!%p864_p3) target bundleno = 58 (0x3a), region = 20 }
  0x27   : > { %s135_s30 = sand.u32 1, %s758_s11   ;;  %s140_s3 = smul.u32 3, %s770_s14 }
  0x28   : > { %s528_s4 = smul.u32 96, %s135_s30  ;;  %s136_s8 = scalar_lea.sflag [#allocation3], %s135_s30 }
  0x29   : > { %s141_s5 = ssub.s32 4, %s140_s3 }
  0x2a   : > { %p142_p0 = scmp.lt.s32.totalorder %s141_s5, 3  ;;  %s139_s17 = scalar_lea.vmem [#allocation2], %s528_s4 }
  0x2c   : > { %s1093_s5 = smov (!%p142_p0, %s141_s5), 3 }
  0x2d   : > { %s895_s6 = sshll.u32 %s1093_s5, 9 }
  0x2e   : > { %s146_s7 = ssub.s32 1536, %s895_s6 }
  0x2f   : > { %147 = vsyncadd %s136_s8, %s146_s7  ;;  %p498_p1 = scmp.ne.s32.totalorder %s895_s6, 0  ;;  %s499_s18 = sshll.u32 %s774_s15, 4 }
  0x30   : > { %s150_s21 = sadd.s32 %s499_s18, %s140_s3  ;;  %s159_s25 = sld [smem:[#allocation0]]  }
  0x31   : > { %s500_s26 = sshll.u32 %s150_s21, 7  ;;  %s167_s27 = sshll.u32 %s139_s17, 4  ;;  %s168_s27 = int_to_ptr.vmem [resolvable:$true] %s167_s27 }
  0x32   : > { %s152_s29 = scalar_lea.hbm %s1056_s0, %s500_s26  ;;  %s788_s28 = smov 512  }
  0x33   : > { %174 = sst [smem:[#allocation9]] %s788_s28  ;;  %s789_s30 = smov 384  }
  0x34   : > { %176 = sst [smem:[#allocation9 + $0x1]] %s789_s30  ;;  %s790_s9 = smov 128  }
  0x35   : > { %178 = sst [smem:[#allocation9 + $0x2]] %s1093_s5  ;;  %s791_s3 = smov 8  }
  0x36   : > { %s503_s4 = sshll.u32 %s159_s25, 26  ;;  %180 = sst [smem:[#allocation9 + $0x3]] %s790_s9 }
  0x37   : > { %s504_s7 = sadd.s32 134217728, %s503_s4  ;;  %182 = sst [smem:[#allocation9 + $0x4]] %s790_s9 }
  0x38   : > { %184 = sst [smem:[#allocation9 + $0x5]] %s791_s3  ;;  %s792_s17 = smov [#allocation8]  }
  0x39   : > { %186 = dma.general (%p498_p1), %s152_s29, %s895_s6, %s168_s27, %s136_s8, %s792_s17, [#allocation9], %s504_s7, 0  }
  0x3a PF: > { %189 = sbr.rel (!%p864_p3) target bundleno = 94 (0x5e), region = 24  ;;  %s190_s19 = sand.u32 (%p864_p3), 1, %s758_s11  }
  0x3b   : > { %s195_s20 = smul.u32 (%p864_p3), 3, %s770_s14  ;;  %s913_s21 = scalar_lea.sflag (%p864_p3), [#allocation6], %s190_s19 }
  0x3c   : > { %s529_s28 = smul.u32 (%p864_p3), 24, %s190_s19 }
  0x3d   : > { %s196_s18 = ssub.s32 (%p864_p3), 4, %s195_s20 }
  0x3e   : > { %p197_p2 = scmp.lt.s32.totalorder (%p864_p3), %s196_s18, 3  ;;  %s194_s29 = scalar_lea.vmem (%p864_p3), [#allocation5], %s529_s28 }
  0x41   : > { %s1095_s18 = smov (!%p197_p2, %s196_s18), 3 }
  0x42   : > { %s910_s5 = sshll.u32 %s1095_s18, 7 }
  0x43   : > { %s201_s9 = ssub.s32 384, %s910_s5 }
  0x44   : > { %202 = vsyncadd %s913_s21, %s201_s9  ;;  %p507_p3 = scmp.ne.s32.totalorder %s910_s5, 0  ;;  %s508_s22 = sshll.u32 %s774_s15, 2 }
  0x45   : > { %s205_s6 = sadd.s32 %s508_s22, %s195_s20  ;;  %s209_s8 = sshll.u32 %s194_s29, 4  ;;  %s918_s8 = int_to_ptr.vmem [resolvable:$true] %s209_s8 }
  0x46   : > { %s509_s25 = sshll.u32 %s205_s6, 7  ;;  %s644_s17 = scalar_lea.hbm %s1057_s1, 1024 }
  0x47   : > { %s923_s30 = scalar_lea.hbm %s1057_s1, %s509_s25 }
  0x48   : > { %s640_s4 = scalar_lea.hbm %s923_s30, %s910_s5  ;;  %p645_p7 = scmp.lt.u32.totalorder %s923_s30, %s1057_s1 }
  0x49   : > { %p641_p4 = scmp.ne.s32.totalorder %s923_s30, %s640_s4  ;;  %p646_p10 = scmp.lt.u32.totalorder %s644_s17, %s640_s4 }
  0x4a   : > { %p648_p13 = scmp.lt.u32.totalorder %s640_s4, %s923_s30 }
  0x4b   : > { %p642_p5 = pnand %p641_p4, %p507_p3  ;;  %p647_p11 = por %p646_p10, %p645_p7 }
  0x4d   : > { %p643_p6 = pneg %p642_p5  ;;  %p649_p0 = por %p648_p13, %p647_p11 }
  0x4f   : > { %p650_p1 = pnand %p649_p0, %p643_p6 }
  0x51   : > { %653 = shalt.err (!%p650_p1)
}
  0x52   : > { %s654_s28 = scalar_lea.vmem %s918_s8, %s910_s5  ;;  %s793_s18 = smov [#allocation5]  }
  0x53   : > { %p655_p2 = scmp.ne.s32.totalorder %s918_s8, %s654_s28  ;;  %s658_s9 = sshll.u32 %s793_s18, 4  ;;  %s659_s9 = int_to_ptr.vmem [resolvable:$false] %s658_s9 }
  0x54   : > { %s660_s29 = scalar_lea.vmem %s659_s9, 768  ;;  %p661_p12 = scmp.lt.s32.totalorder %s918_s8, %s659_s9 }
  0x55   : > { %p656_p4 = pnand %p655_p2, %p507_p3  ;;  %p662_p7 = scmp.lt.s32.totalorder %s660_s29, %s654_s28 }
  0x57   : > { %p657_p5 = pneg %p656_p4  ;;  %p663_p10 = por %p662_p7, %p661_p12 }
  0x59   : > { %p664_p11 = pnand %p663_p10, %p657_p5 }
  0x5b   : > { %667 = shalt.err (!%p664_p11)
}
  0x5c   : > { %s794_s22 = smov 128   ;;  %s795_s6 = smov 8  }
  0x5d   : > { %215 = dma.hbm_to_vmem [thread:$0]  (%p507_p3), %s923_s30, %s910_s5, %s918_s8, %s913_s21, %s794_s22, %s794_s22, %s795_s6  }
  0x5e PF: > { %p512_p6 = scmp.ge.s32.totalorder %s778_s16, 1  ;;  %p217_p13 = scmp.lt.s32.totalorder %s778_s16, 5 }
  0x60   : > { %p218_p0 = pnand %p512_p6, %p217_p13 }
  0x61   : > { %s953_s25 = sand.u32 (!%p218_p0), 1, %s754_s10  }
  0x62   : > { %221 = sbr.rel (%p218_p0) target bundleno = 198 (0xc6), region = 28  ;;  %s224_s27 = scalar_lea.sflag (!%p218_p0), [#allocation3], %s953_s25 }
  0x63   : > { %s530_s26 = smul.u32 (!%p218_p0), 96, %s953_s25 }
  0x65   : > { %s957_s4 = scalar_lea.vmem (!%p218_p0), [#allocation2], %s530_s26 }
  0x69   : > { %737 = dma.done.wait (%p872_p8), %s224_s27, 1536  }
  0x6a   : > { %739 = vsyncadd (%p872_p8), %s224_s27, 4294965760  ;;  %s531_s5 = smul.u32 24, %s953_s25  ;;  %s233_s21 = scalar_lea.sflag [#allocation6], %s953_s25 }
  0x6c   : > { %s965_s8 = scalar_lea.vmem [#allocation5], %s531_s5 }
  0x6d   : > { %741 = dma.done.wait (%p872_p8), %s233_s21, 384  }
  0x6e   : > { %743 = vsyncadd (%p872_p8), %s233_s21, 4294966912  ;;  %s513_s30 = sshll.u32 %s953_s25, 3  ;;  %v272_v0 = vlaneseq  ;;  %v978_v3 = vmov 0.0   ;;  %s980_s3 = smov 0  }
  0x6f   : > { %s976_s7 = scalar_lea.vmem [#allocation7], %s513_s30 }
  0x70   : > { %v972_v1 = vshrl.u32 %v272_v0, 7  ;;  %v974_v2 = vand.u32 127, %v272_v0 }
  0x71 LB: >> { %s987_s23 = sshll.u32 %s786_s3, 3  ;;  %s328_s19 = smul.u32 24, %s762_s12  ;;  %s786_s3 = sphi %s980_s3, %s281_s3   ;;  %v782_v3 = vphi %v978_v3, %v1072_v3  }
  0x72   : >> { %s284_s17 = scalar_lea.vmem %s957_s4, %s987_s23 [#allocation2]  ;;  %s295_s28 = scalar_lea.vmem %s965_s8, %s987_s23 [#allocation5] }
  0x73   : >> { %v285_v4 = vld [vmem:[%s284_s17] sm:$0xff]  ;;  %v516_v5 = vld [vmem:[%s284_s17 + $0x18] sm:$0xff]  ;;  %v518_v6 = vld [vmem:[%s284_s17 + $0x30] sm:$0xff]  ;;  %s329_s20 = sadd.s32 %s987_s23, %s328_s19  ;;  %s281_s3 = sadd.s32 1, %s786_s3  }
  0x74   : >> { %v297_v7 = vmax.f32 %v285_v4, %v516_v5  ;;  %v520_v8 = vld [vmem:[%s284_s17 + $0x48] sm:$0xff]  ;;  %v330_v26 = vstv %s329_s20  ;;  %v296_v28 = vld [vmem:[%s295_s28] sm:$0xff]  ;;  %p278_p8 = scmp.ge.s32.totalorder %s281_s3, 3  }
  0x75   : >> { %v331_v27 = vadd.s32 %v330_v26, %v972_v1  ;;  %vm320_vm0 = vcmp.eq.s32.totalorder %v296_v28, 1  ;;  %vm321_vm1 = vcmp.eq.s32.totalorder %v296_v28, 2  ;;  %vm322_vm2 = vcmp.eq.s32.totalorder %v296_v28, 3  ;;  %s522_s18 = sshll.u32 (%p278_p8), %s766_s13, 1  ;;  %s360_s29 = sshll.u32 (%p278_p8), %s976_s7, 4  ;;  %s1006_s29 = int_to_ptr.vmem [resolvable:$true] %s360_s29 }
  0x76   : >> { %v298_v9 = vmax.f32 %v297_v7, %v518_v6  ;;  %s356_s9 = sadd.s32 (%p278_p8), %s762_s12, %s522_s18  ;;  %s345_s4 = scalar_lea.sflag (%p278_p8), [#allocation4], %s953_s25 }
  0x77   : >> { %v332_v29 = vmul.u32 128, %v331_v27  ;;  %s523_s22 = sshll.u32 (%p278_p8), %s356_s9, 7  ;;  %s668_s5 = scalar_lea.vmem (%p278_p8), %s1006_s29, 128 }
  0x78   : >> { %v299_v10 = vmax.f32 %v298_v9, %v520_v8  ;;  %s358_s27 = scalar_lea.hbm (%p278_p8), %s1058_s2, %s523_s22  ;;  %p669_p12 = scmp.ne.s32.totalorder (%p278_p8), %s1006_s29, %s668_s5 }
  0x79   : >> { %v333_v36 = vadd.s32 %v332_v29, %v974_v2  ;;  %s796_s13 = smov (%p278_p8), [#allocation7]  }
  0x7a   : >> { %v300_v11 = vsub.f32 %v285_v4, %v299_v10  ;;  %v303_v12 = vsub.f32 %v516_v5, %v299_v10  ;;  %v306_v13 = vsub.f32 %v518_v6, %v299_v10  ;;  %v309_v14 = vsub.f32 %v520_v8, %v299_v10  ;;  %p670_p3 = pnand (%p278_p8), %p669_p12, %p876_p9  ;;  %s672_s12 = sshll.u32 (%p278_p8), %s796_s13, 4  ;;  %s673_s12 = int_to_ptr.vmem [resolvable:$false] %s672_s12 }
  0x7b   : >> { %vm334_vm3 = vcmp.lt.s32.totalorder %v333_v36, 4096  ;;  %s674_s21 = scalar_lea.vmem (%p278_p8), %s673_s12, 256  ;;  %p675_p2 = scmp.lt.s32.totalorder (%p278_p8), %s1006_s29, %s673_s12 }
  0x7c   : >> { %v301_v15 = vmul.f32 1.442695, %v300_v11  ;;  %v304_v16 = vmul.f32 1.442695, %v303_v12  ;;  %v307_v17 = vmul.f32 1.442695, %v306_v13  ;;  %p671_p1 = pneg (%p278_p8), %p670_p3  ;;  %p676_p4 = scmp.lt.s32.totalorder (%p278_p8), %s674_s21, %s668_s5 }
  0x7d   : >> { %v310_v18 = vmul.f32 1.442695, %v309_v14 }
  0x7e   : >> { %628 = vpow2.f32 %v301_v15  ;;  %p677_p5 = por (%p278_p8), %p676_p4, %p675_p2 }
  0x7f   : >> { %630 = vpow2.f32 %v304_v16 }
  0x80   : >> { %632 = vpow2.f32 %v307_v17  ;;  %p678_p7 = pnand (%p278_p8), %p677_p5, %p671_p1 }
  0x81   : >> { %634 = vpow2.f32 %v310_v18 }
  0x88   : >> { %v629_v19 = vpop.eup %628 }
  0x89   : >> { %v631_v20 = vpop.eup %630 }
  0x8a   : >> { %v633_v21 = vpop.eup %632  ;;  %v312_v22 = vadd.f32 %v631_v20, %v629_v19 }
  0x8b   : >> { %v635_v23 = vpop.eup %634 }
  0x8c   : >> { %v313_v24 = vadd.f32 %v633_v21, %v312_v22 }
  0x8e   : >> { %v314_v25 = vadd.f32 %v635_v23, %v313_v24 }
  0x90   : >> { %636 = vrcp.f32 %v314_v25 }
  0x9a   : >> { %v637_v30 = vpop.eup %636 }
  0x9b   : >> { %v316_v31 = vmul.f32 %v637_v30, %v629_v19  ;;  %v317_v32 = vmul.f32 %v637_v30, %v631_v20  ;;  %v318_v33 = vmul.f32 %v637_v30, %v633_v21  ;;  %v319_v34 = vmul.f32 %v637_v30, %v635_v23 }
  0x9d   : >> { %v323_v35 = vsel %vm320_vm0, %v317_v32, %v316_v31 }
  0x9e   : >> { %v324_v37 = vsel %vm321_vm1, %v318_v33, %v323_v35 }
  0x9f   : >> { %v325_v38 = vsel %vm322_vm2, %v319_v34, %v324_v37 }
  0xa0   : >> { %v326_v39 = vmul.f32 0.99998665, %v325_v38 }
  0xa2   : >> { %v327_v40 = vadd.f32 1.3333333e-05, %v326_v39 }
  0xa4   : >> { %v335_v41 = vsel %vm334_vm3, %v327_v40, 1.0 }
  0xa5   : >> { %638 = vlog2.f32 %v335_v41  ;;  %v338_v42 = vsub.f32 1.0, %v335_v41 }
  0xa7   : >> { %v339_v43 = vmul.f32 %v338_v42, %v338_v42 }
  0xaf   : >> { %v639_v44 = vpop.eup %638 }
  0xb0   : >> { %v337_v45 = vmul.f32 0.6931472, %v639_v44  ;;  %280 = sbr.rel (!%p278_p8) target bundleno = 113 (0x71), region = 103 }
  0xb2   : >> { %v340_v46 = vmul.f32 %v339_v43, %v337_v45 }
  0xb4   : >> { %v341_v47 = vadd.f32 %v782_v3, %v340_v46  }
  0xb6   : >> { %v1072_v3 = vmov %v341_v47  ;;  %v342_v48 = vmul.f32 (%p278_p8), -1.0, %v341_v47 }
  0xb8   : > { %343 = vst [vmem:[%s976_s7] sm:$0xff] %v342_v48 }
  0xb9   : > { %681 = shalt.err (!%p678_p7)
}
  0xba   : > { %s682_s8 = scalar_lea.hbm %s358_s27, 128  ;;  %s686_s7 = scalar_lea.hbm %s1058_s2, 512 }
  0xbb   : > { %p683_p10 = scmp.ne.s32.totalorder %s358_s27, %s682_s8  ;;  %p687_p13 = scmp.lt.u32.totalorder %s358_s27, %s1058_s2 }
  0xbc   : > { %p688_p0 = scmp.lt.u32.totalorder %s686_s7, %s682_s8  ;;  %p690_p12 = scmp.lt.u32.totalorder %s682_s8, %s358_s27 }
  0xbd   : > { %p684_p11 = pnand %p683_p10, %p876_p9 }
  0xbe   : > { %p689_p8 = por %p688_p0, %p687_p13 }
  0xbf   : > { %p685_p6 = pneg %p684_p11 }
  0xc0   : > { %p691_p3 = por %p690_p12, %p689_p8 }
  0xc2   : > { %p692_p1 = pnand %p691_p3, %p685_p6 }
  0xc4   : > { %695 = shalt.err (!%p692_p1)
}
  0xc5   : > { %534 = dma.vmem_to_hbm [thread:$0]  (%p876_p9), %s1006_s29, 128, %s358_s27, %s345_s4  }
  0xc6 PF: > { %s1073_s17 = sld [smem:[#allocation13_spill]]  ;;  %s1074_s19 = sld [smem:[#allocation16_spill]] }
  0xc7   : > { %p540_p2 = scmp.ge.s32.totalorder %s778_s16, 2 }
  0xcc   : > { %s372_s20 = sand.u32 1, %s1073_s17   ;;  %p1075_p4 = scmp.ne.s32.totalorder %s1074_s19, 0 }
  0xcd   : > { %s373_s28 = scalar_lea.sflag [#allocation4], %s372_s20 }
  0xce   : > { %p537_p5 = pnand %p540_p2, %p1075_p4 }
  0xd0   : > { %745 = dma.done.wait (!%p537_p5), %s373_s28, 128  }
  0xd1   : > { %747 = vsyncadd (!%p537_p5), %s373_s28, 4294967168  ;;  %s21_s16 = sadd.s32 1, %s778_s16   ;;  %s1076_s18 = sld [smem:[#allocation17_spill]] }
  0xd2   : > { %p18_p7 = scmp.ge.s32.totalorder %s21_s16, 6   ;;  %s1077_s24 = sld [smem:[#allocation14_spill]] }
  0xd3   : > { %s1078_s29 = sld [smem:[#allocation15_spill]]  ;;  %s1079_s9 = smov %s754_s10 }
  0xd4   : > { %s1080_s10 = smov %s758_s11  ;;  %s1082_s12 = smov %s770_s14 }
  0xd5   : > { %s1083_s13 = smov %s774_s15  ;;  %20 = sbr.rel (!%p18_p7) target bundleno = 9 (0x9), region = 114 }
  0xd7   : > { %s1081_s11 = smov %s1076_s18 }
  0xd8   : > { %s1084_s14 = smov %s1077_s24 }
  0xd9   : > { %s1085_s15 = smov %s1078_s29 }
  0xdc   :  { %378 = vsyncpa [#allocation3], 1 }
  0xdd   :  { %380 = vsyncpa [#allocation3 + $0x1], 1 }
  0xde   :  { %381 = vsyncpa [#allocation6], 1 }
  0xdf   :  { %383 = vsyncpa [#allocation6 + $0x1], 1 }
  0xe0   :  { %384 = vsyncpa [#allocation4], 1 }
  0xe1   :  { %386 = vsyncpa [#allocation4 + $0x1], 1 }

</bundles_post_ra>
